<compile_context>
chip_gen: v7x
topology: tpu7x:2x2x1
jax: 0.10.0
libtpu: 0.0.40
codegen_flags: <defaults>
</compile_context>

<pallas_src>
import functools

import jax
import jax.numpy as jnp
from jax.experimental import pallas as pl
from jax.experimental.pallas import tpu as pltpu


def lstm_encoder_kernel(gin_ref, whh_ref, whead_ref, bhead_ref, noise_ref,
                        out_ref, h_scr, c_scr, *, time_chunk, hidden, latent):
    """Grid = (batch_blocks, time_chunks); one invocation = `time_chunk` steps.

    gin_ref  : (Tc, Bt, 4H) bf16 -- x_t @ W_ih + b, time-major, i/f/o cols *0.5
    whh_ref  : (H, 4H)      bf16 -- recurrent weights (same 0.5 pre-scaling)
    whead_ref: (H, 2L)      bf16 -- fused [W_mu | W_logvar]
    bhead_ref: (1, 2L)      f32  -- fused [b_mu | b_logvar]
    noise_ref: (Bt, L)      f32  -- eps ~ N(0,1) (plays torch.randn_like)
    out_ref  : (Bt, 3L)     f32  -- [z | mu | logvar]
    h_scr    : (Bt, H)      bf16 -- recurrent hidden carry
    c_scr    : (Bt, H)      f32  -- cell-state carry
    """
    t_step = pl.program_id(1)           # time-chunk index (sequential axis)
    H = hidden
    L = latent

    @pl.when(t_step == 0)
    def _init():
        h_scr[...] = jnp.zeros_like(h_scr)
        c_scr[...] = jnp.zeros_like(c_scr)

    h = h_scr[...]                      # (Bt, H) bf16
    c = c_scr[...]                      # (Bt, H) f32

    # Fully unrolled recurrence over the chunk.  Each step reads its own
    # contiguous, lane-dense (Bt, 4H) slab from the ref (time-major layout),
    # so nothing proportional to Tc is ever live in vregs and the vld hides
    # under the recurrent matmul.
    for t in range(time_chunk):
        pre = gin_ref[t] + jnp.dot(h, whh_ref[...],
                                   preferred_element_type=jnp.float32)
        # One full-width tanh over (Bt, 4H); i/f/o pre-activations were scaled
        # by 0.5 in the wrapper, so sigmoid(x) == 0.5 * tanh(0.5 * x) + 0.5.
        tg = jnp.tanh(pre)
        i_g = 0.5 * tg[:, 0 * H:1 * H] + 0.5
        f_g = 0.5 * tg[:, 1 * H:2 * H] + 0.5
        g_g = tg[:, 2 * H:3 * H]
        o_g = 0.5 * tg[:, 3 * H:4 * H] + 0.5
        c = f_g * c + i_g * g_g
        h = (o_g * jnp.tanh(c)).astype(jnp.bfloat16)   # bf16 carry, f32 cell

    h_scr[...] = h
    c_scr[...] = c

    @pl.when(t_step == pl.num_programs(1) - 1)
    def _epilogue():
        head = (jnp.dot(h, whead_ref[...], preferred_element_type=jnp.float32)
                + bhead_ref[...])                       # (Bt, 2L) = [mu | logvar]
        mu = head[:, 0:L]
        lv = head[:, L:2 * L]
        z = mu + jnp.exp(0.5 * lv) * noise_ref[...]
        out_ref[:, L:3 * L] = head                      # mu, logvar in one store
        out_ref[:, 0:L] = z


def lstm_encoder(x, params, noise, *, time_chunk=None, batch_tile=None):
    """x: (B, T, D) f32, noise: (B, L) f32.  Returns (z, mu, logvar), (B, L) f32."""
    B, T, D = x.shape
    H = params["w_hh"].shape[0]
    L = params["w_mu"].shape[1]

    Bt = B if batch_tile is None else batch_tile        # on v7x: Bt = B//2 (mult of 8)
    assert B % Bt == 0 and (Bt == B or Bt % 8 == 0), "bad batch_tile"

    f32, bf16 = jnp.float32, jnp.bfloat16

    # --- time chunk from the VMEM budget (amortize ~0.35us/grid-step) -------
    def gin_buf_bytes(c):                                # double-buffered bf16 gin
        return 2 * c * Bt * 4 * H * 2

    if time_chunk is None:
        budget = 24 * 2 ** 20   # conservative so the same pick fits v7x's 64 MiB VMEM
        time_chunk = T
        for c in (64, 48, 32, 24, 16, 8):
            if T % c == 0 and gin_buf_bytes(c) <= budget:
                time_chunk = c
                break
    tc = time_chunk
    assert T % tc == 0, "sequence length must be divisible by time_chunk"

    # --- gate pre-scaling: fold 0.5 into i/f/o columns (exact power of two,
    #     commutes with the bf16 cast) so the kernel uses one tanh per step ---
    gate_scale = jnp.concatenate(
        [jnp.full((1, H), 0.5, f32), jnp.full((1, H), 0.5, f32),
         jnp.ones((1, H), f32), jnp.full((1, H), 0.5, f32)], axis=1)
    w_ih_s = (params["w_ih"] * gate_scale).astype(bf16)            # (D, 4H)
    w_hh_s = (params["w_hh"] * gate_scale).astype(bf16)            # (H, 4H)
    b_s = (params["b"] * gate_scale).astype(f32)                   # (1, 4H)

    # --- hoisted input projection, TIME-MAJOR, streamed in bf16 -------------
    # One (T*B, D) x (D, 4H) MXU matmul in the wrapper; the kernel only does
    # the serial h @ W_hh per step.  bf16 halves gin's VMEM + DMA bytes.
    xt = jnp.transpose(x, (1, 0, 2)).astype(bf16)                  # (T, B, D)
    gin = (jax.lax.dot_general(
        xt, w_ih_s, dimension_numbers=(((2,), (0,)), ((), ())),
        preferred_element_type=f32) + b_s).astype(bf16)            # (T, B, 4H) bf16

    # --- fused output heads --------------------------------------------------
    w_head = jnp.concatenate([params["w_mu"], params["w_lv"]], axis=1).astype(bf16)
    b_head = jnp.concatenate([params["b_mu"], params["b_lv"]], axis=1).astype(f32)

    kernel = functools.partial(lstm_encoder_kernel,
                               time_chunk=tc, hidden=H, latent=L)

    # Grid-constant operands: single-buffer (double buffering a constant block
    # only doubles its VMEM; reclaimed budget funds a larger time chunk).
    const = pl.Buffered(1)

    # Size the scoped VMEM limit from the actual buffers, with headroom,
    # instead of the ~16/32 MiB default.
    needed = (gin_buf_bytes(tc)                                   # gin x2 buffers
              + H * 4 * H * 2 + H * 2 * L * 2 + 2 * L * 4         # single-buffered weights
              + 2 * Bt * L * 4 + 2 * Bt * 3 * L * 4               # noise + out (x2)
              + Bt * H * (2 + 4))                                 # h bf16 + c f32 scratch
    vmem_limit = int(min(100 * 2 ** 20, max(2 * needed + 8 * 2 ** 20, 16 * 2 ** 20)))

    grid_spec = pltpu.PrefetchScalarGridSpec(
        num_scalar_prefetch=0,
        grid=(B // Bt, T // tc),                                   # (batch, time)
        in_specs=[
            pl.BlockSpec((tc, Bt, 4 * H), lambda b, s: (s, b, 0)), # time-major gin
            pl.BlockSpec((H, 4 * H), lambda b, s: (0, 0), pipeline_mode=const),
            pl.BlockSpec((H, 2 * L), lambda b, s: (0, 0), pipeline_mode=const),
            pl.BlockSpec((1, 2 * L), lambda b, s: (0, 0), pipeline_mode=const),
            pl.BlockSpec((Bt, L), lambda b, s: (b, 0)),            # noise (per batch block)
        ],
        out_specs=pl.BlockSpec((Bt, 3 * L), lambda b, s: (b, 0)),  # [z | mu | logvar]
        scratch_shapes=[
            pltpu.VMEM((Bt, H), jnp.bfloat16),                     # h carry (bf16)
            pltpu.VMEM((Bt, H), jnp.float32),                      # c carry (f32)
        ],
    )

    out = pl.pallas_call(
        kernel,
        grid_spec=grid_spec,
        out_shape=jax.ShapeDtypeStruct((B, 3 * L), jnp.float32),
        compiler_params=pltpu.CompilerParams(
            dimension_semantics=("parallel", "arbitrary"),         # batch ∥, time seq.
            vmem_limit_bytes=vmem_limit),
    )(gin, w_hh_s, w_head, b_head, noise)

    return out[:, 0:L], out[:, L:2 * L], out[:, 2 * L:3 * L]


def init_params(key, input_dim, hidden_dim, latent_dim):
    ks = jax.random.split(key, 8)
    s = 1.0 / jnp.sqrt(hidden_dim)
    # Stored pre-transposed relative to PyTorch: (in_features, out_features).
    w_ih = jax.random.uniform(ks[0], (input_dim, 4 * hidden_dim), jnp.float32, -s, s)
    w_hh = jax.random.uniform(ks[1], (hidden_dim, 4 * hidden_dim), jnp.float32, -s, s)
    b_ih = jax.random.uniform(ks[2], (1, 4 * hidden_dim), jnp.float32, -s, s)
    b_hh = jax.random.uniform(ks[3], (1, 4 * hidden_dim), jnp.float32, -s, s)
    w_mu = jax.random.uniform(ks[4], (hidden_dim, latent_dim), jnp.float32, -s, s)
    b_mu = jax.random.uniform(ks[5], (1, latent_dim), jnp.float32, -s, s)
    w_lv = jax.random.uniform(ks[6], (hidden_dim, latent_dim), jnp.float32, -s, s)
    b_lv = jax.random.uniform(ks[7], (1, latent_dim), jnp.float32, -s, s)
    return {"w_ih": w_ih, "w_hh": w_hh, "b": b_ih + b_hh,
            "w_mu": w_mu, "b_mu": b_mu, "w_lv": w_lv, "b_lv": b_lv}


if __name__ == "__main__":
    B, T, D, H, L = 8, 16, 16, 32, 8
    key = jax.random.PRNGKey(0)
    kx, kp, kn = jax.random.split(key, 3)

    x = jax.random.normal(kx, (B, T, D), jnp.float32)
    params = init_params(kp, D, H, L)
    noise = jax.random.normal(kn, (B, L), jnp.float32)   # torch.randn_like stand-in

    z, mu, logvar = lstm_encoder(x, params, noise, time_chunk=8)  # 2 time chunks
    jax.block_until_ready((z, mu, logvar))

    # Pure-JAX reference mirroring the kernel's rounding (bf16 weights/x/h and
    # bf16-streamed gate inputs; f32 accumulation and f32 cell state), using
    # the standard sigmoid formulation.
    def ref(x, p, noise):
        bf = lambda a: a.astype(jnp.bfloat16).astype(jnp.float32)
        w_ih, w_hh = bf(p["w_ih"]), bf(p["w_hh"])
        w_mu, w_lv = bf(p["w_mu"]), bf(p["w_lv"])
        gx = bf(bf(x) @ w_ih + p["b"])                 # (B, T, 4H), bf16-rounded
        h = jnp.zeros((B, H), jnp.float32)
        c = jnp.zeros((B, H), jnp.float32)
        for t in range(T):
            g = gx[:, t, :] + bf(h) @ w_hh
            i = jax.nn.sigmoid(g[:, 0:H]); f = jax.nn.sigmoid(g[:, H:2 * H])
            gg = jnp.tanh(g[:, 2 * H:3 * H]); o = jax.nn.sigmoid(g[:, 3 * H:4 * H])
            c = f * c + i * gg
            h = o * jnp.tanh(c)
        mu_r = bf(h) @ w_mu + p["b_mu"]
        lv_r = bf(h) @ w_lv + p["b_lv"]
        return mu_r + jnp.exp(0.5 * lv_r) * noise, mu_r, lv_r

    z_r, mu_r, lv_r = ref(x, params, noise)
    assert jnp.allclose(mu, mu_r, atol=1e-2), "mu mismatch"
    assert jnp.allclose(logvar, lv_r, atol=1e-2), "logvar mismatch"
    assert jnp.allclose(z, z_r, atol=1e-2), "z mismatch"

    print("KERNEL_OK")
</pallas_src>

<mosaic_0001>
module attributes {stable_mosaic.version = 11 : i64} {
  func.func @lstm_encoder_kernel(%arg0: i32, %arg1: i32, %arg2: memref<8x8x128xbf16, #tpu.memory_space<vmem>>, %arg3: memref<32x128xbf16, #tpu.memory_space<vmem>>, %arg4: memref<32x16xbf16, #tpu.memory_space<vmem>>, %arg5: memref<1x16xf32, #tpu.memory_space<vmem>>, %arg6: memref<8x8xf32, #tpu.memory_space<vmem>>, %arg7: memref<8x24xf32, #tpu.memory_space<vmem>>, %arg8: memref<8x32xbf16, #tpu.memory_space<vmem>>, %arg9: memref<8x32xf32, #tpu.memory_space<vmem>>) attributes {dimension_semantics = [#tpu.dimension_semantics<parallel>, #tpu.dimension_semantics<arbitrary>], iteration_bounds = array<i64: 1, 2>, scalar_prefetch = 0 : i64, scratch_operands = 2 : i64, tpu.core_type = #tpu.core_type<tc>, window_params = [{transform_indices = @transform_0, window_bounds = array<i64: 8, 8, 128>}, {pipeline_mode = #tpu.pipeline_mode<synchronous>, transform_indices = @transform_1, window_bounds = array<i64: 32, 128>}, {pipeline_mode = #tpu.pipeline_mode<synchronous>, transform_indices = @transform_2, window_bounds = array<i64: 32, 16>}, {pipeline_mode = #tpu.pipeline_mode<synchronous>, transform_indices = @transform_3, window_bounds = array<i64: 1, 16>}, {transform_indices = @transform_4, window_bounds = array<i64: 8, 8>}, {transform_indices = @transform_5, window_bounds = array<i64: 8, 24>}]} {
    %c0_i32 = arith.constant 0 : i32
    %0 = arith.cmpi eq, %arg1, %c0_i32 : i32
    %1 = arith.extui %0 : i1 to i32
    %c0_i32_0 = arith.constant 0 : i32
    %2 = arith.cmpi ne, %1, %c0_i32_0 : i32
    scf.if %2 {
      %cst_97 = arith.constant 0.000000e+00 : bf16
      %242 = vector.broadcast %cst_97 : bf16 to vector<8x32xbf16>
      %c0_98 = arith.constant 0 : index
      %c0_99 = arith.constant 0 : index
      %243 = vector.load %arg8[%c0_98, %c0_99] : memref<8x32xbf16, #tpu.memory_space<vmem>>, vector<8x32xbf16>
      tpu.vector_store %arg8[%c0_98, %c0_99], %242 {strides = array<i32>} : memref<8x32xbf16, #tpu.memory_space<vmem>>, vector<8x32xbf16>,
      %cst_100 = arith.constant 0.000000e+00 : f32
      %244 = vector.broadcast %cst_100 : f32 to vector<8x32xf32>
      %c0_101 = arith.constant 0 : index
      %c0_102 = arith.constant 0 : index
      %245 = vector.load %arg9[%c0_101, %c0_102] : memref<8x32xf32, #tpu.memory_space<vmem>>, vector<8x32xf32>
      tpu.vector_store %arg9[%c0_101, %c0_102], %244 {strides = array<i32>} : memref<8x32xf32, #tpu.memory_space<vmem>>, vector<8x32xf32>,
    } else {
    }
    %c0 = arith.constant 0 : index
    %c0_1 = arith.constant 0 : index
    %3 = vector.load %arg8[%c0, %c0_1] : memref<8x32xbf16, #tpu.memory_space<vmem>>, vector<8x32xbf16>
    %c0_2 = arith.constant 0 : index
    %c0_3 = arith.constant 0 : index
    %4 = vector.load %arg9[%c0_2, %c0_3] : memref<8x32xf32, #tpu.memory_space<vmem>>, vector<8x32xf32>
    %c0_4 = arith.constant 0 : index
    %c0_5 = arith.constant 0 : index
    %c0_6 = arith.constant 0 : index
    %5 = vector.load %arg2[%c0_4, %c0_5, %c0_6] : memref<8x8x128xbf16, #tpu.memory_space<vmem>>, vector<1x8x128xbf16>
    %6 = vector.shape_cast %5 : vector<1x8x128xbf16> to vector<8x128xbf16>
    %c0_7 = arith.constant 0 : index
    %c0_8 = arith.constant 0 : index
    %7 = vector.load %arg3[%c0_7, %c0_8] : memref<32x128xbf16, #tpu.memory_space<vmem>>, vector<32x128xbf16>
    %cst = arith.constant dense<0.000000e+00> : vector<8x128xf32>
    %8 = tpu.matmul %3, %7, %cst {dimension_numbers = #tpu.dot_dimension_numbers<[1], [0], [0], [1], [0, 0, 1, 1], [], []>} : vector<8x32xbf16>, vector<32x128xbf16>, vector<8x128xf32> -> vector<8x128xf32>
    %9 = arith.extf %6 : vector<8x128xbf16> to vector<8x128xf32>
    %10 = arith.addf %9, %8 : vector<8x128xf32>
    %11 = math.tanh %10 : vector<8x128xf32>
    %12 = vector.extract_strided_slice %11 {offsets = [0, 0], sizes = [8, 32], strides = [1, 1]} : vector<8x128xf32> to vector<8x32xf32>
    %cst_9 = arith.constant 5.000000e-01 : f32
    %13 = vector.broadcast %cst_9 : f32 to vector<8x32xf32>
    %14 = arith.mulf %13, %12 : vector<8x32xf32>
    %cst_10 = arith.constant 5.000000e-01 : f32
    %15 = vector.broadcast %cst_10 : f32 to vector<8x32xf32>
    %16 = arith.addf %14, %15 : vector<8x32xf32>
    %17 = vector.extract_strided_slice %11 {offsets = [0, 32], sizes = [8, 32], strides = [1, 1]} : vector<8x128xf32> to vector<8x32xf32>
    %cst_11 = arith.constant 5.000000e-01 : f32
    %18 = vector.broadcast %cst_11 : f32 to vector<8x32xf32>
    %19 = arith.mulf %18, %17 : vector<8x32xf32>
    %cst_12 = arith.constant 5.000000e-01 : f32
    %20 = vector.broadcast %cst_12 : f32 to vector<8x32xf32>
    %21 = arith.addf %19, %20 : vector<8x32xf32>
    %22 = vector.extract_strided_slice %11 {offsets = [0, 64], sizes = [8, 32], strides = [1, 1]} : vector<8x128xf32> to vector<8x32xf32>
    %23 = vector.extract_strided_slice %11 {offsets = [0, 96], sizes = [8, 32], strides = [1, 1]} : vector<8x128xf32> to vector<8x32xf32>
    %cst_13 = arith.constant 5.000000e-01 : f32
    %24 = vector.broadcast %cst_13 : f32 to vector<8x32xf32>
    %25 = arith.mulf %24, %23 : vector<8x32xf32>
    %cst_14 = arith.constant 5.000000e-01 : f32
    %26 = vector.broadcast %cst_14 : f32 to vector<8x32xf32>
    %27 = arith.addf %25, %26 : vector<8x32xf32>
    %28 = arith.mulf %21, %4 : vector<8x32xf32>
    %29 = arith.mulf %16, %22 : vector<8x32xf32>
    %30 = arith.addf %28, %29 : vector<8x32xf32>
    %31 = math.tanh %30 : vector<8x32xf32>
    %32 = arith.mulf %27, %31 : vector<8x32xf32>
    %33 = arith.truncf %32 : vector<8x32xf32> to vector<8x32xbf16>
    %c1 = arith.constant 1 : index
    %c0_15 = arith.constant 0 : index
    %c0_16 = arith.constant 0 : index
    %34 = vector.load %arg2[%c1, %c0_15, %c0_16] : memref<8x8x128xbf16, #tpu.memory_space<vmem>>, vector<1x8x128xbf16>
    %35 = vector.shape_cast %34 : vector<1x8x128xbf16> to vector<8x128xbf16>
    %c0_17 = arith.constant 0 : index
    %c0_18 = arith.constant 0 : index
    %36 = vector.load %arg3[%c0_17, %c0_18] : memref<32x128xbf16, #tpu.memory_space<vmem>>, vector<32x128xbf16>
    %cst_19 = arith.constant dense<0.000000e+00> : vector<8x128xf32>
    %37 = tpu.matmul %33, %36, %cst_19 {dimension_numbers = #tpu.dot_dimension_numbers<[1], [0], [0], [1], [0, 0, 1, 1], [], []>} : vector<8x32xbf16>, vector<32x128xbf16>, vector<8x128xf32> -> vector<8x128xf32>
    %38 = arith.extf %35 : vector<8x128xbf16> to vector<8x128xf32>
    %39 = arith.addf %38, %37 : vector<8x128xf32>
    %40 = math.tanh %39 : vector<8x128xf32>
    %41 = vector.extract_strided_slice %40 {offsets = [0, 0], sizes = [8, 32], strides = [1, 1]} : vector<8x128xf32> to vector<8x32xf32>
    %cst_20 = arith.constant 5.000000e-01 : f32
    %42 = vector.broadcast %cst_20 : f32 to vector<8x32xf32>
    %43 = arith.mulf %42, %41 : vector<8x32xf32>
    %cst_21 = arith.constant 5.000000e-01 : f32
    %44 = vector.broadcast %cst_21 : f32 to vector<8x32xf32>
    %45 = arith.addf %43, %44 : vector<8x32xf32>
    %46 = vector.extract_strided_slice %40 {offsets = [0, 32], sizes = [8, 32], strides = [1, 1]} : vector<8x128xf32> to vector<8x32xf32>
    %cst_22 = arith.constant 5.000000e-01 : f32
    %47 = vector.broadcast %cst_22 : f32 to vector<8x32xf32>
    %48 = arith.mulf %47, %46 : vector<8x32xf32>
    %cst_23 = arith.constant 5.000000e-01 : f32
    %49 = vector.broadcast %cst_23 : f32 to vector<8x32xf32>
    %50 = arith.addf %48, %49 : vector<8x32xf32>
    %51 = vector.extract_strided_slice %40 {offsets = [0, 64], sizes = [8, 32], strides = [1, 1]} : vector<8x128xf32> to vector<8x32xf32>
    %52 = vector.extract_strided_slice %40 {offsets = [0, 96], sizes = [8, 32], strides = [1, 1]} : vector<8x128xf32> to vector<8x32xf32>
    %cst_24 = arith.constant 5.000000e-01 : f32
    %53 = vector.broadcast %cst_24 : f32 to vector<8x32xf32>
    %54 = arith.mulf %53, %52 : vector<8x32xf32>
    %cst_25 = arith.constant 5.000000e-01 : f32
    %55 = vector.broadcast %cst_25 : f32 to vector<8x32xf32>
    %56 = arith.addf %54, %55 : vector<8x32xf32>
    %57 = arith.mulf %50, %30 : vector<8x32xf32>
    %58 = arith.mulf %45, %51 : vector<8x32xf32>
    %59 = arith.addf %57, %58 : vector<8x32xf32>
    %60 = math.tanh %59 : vector<8x32xf32>
    %61 = arith.mulf %56, %60 : vector<8x32xf32>
    %62 = arith.truncf %61 : vector<8x32xf32> to vector<8x32xbf16>
    %c2 = arith.constant 2 : index
    %c0_26 = arith.constant 0 : index
    %c0_27 = arith.constant 0 : index
    %63 = vector.load %arg2[%c2, %c0_26, %c0_27] : memref<8x8x128xbf16, #tpu.memory_space<vmem>>, vector<1x8x128xbf16>
    %64 = vector.shape_cast %63 : vector<1x8x128xbf16> to vector<8x128xbf16>
    %c0_28 = arith.constant 0 : index
    %c0_29 = arith.constant 0 : index
    %65 = vector.load %arg3[%c0_28, %c0_29] : memref<32x128xbf16, #tpu.memory_space<vmem>>, vector<32x128xbf16>
    %cst_30 = arith.constant dense<0.000000e+00> : vector<8x128xf32>
    %66 = tpu.matmul %62, %65, %cst_30 {dimension_numbers = #tpu.dot_dimension_numbers<[1], [0], [0], [1], [0, 0, 1, 1], [], []>} : vector<8x32xbf16>, vector<32x128xbf16>, vector<8x128xf32> -> vector<8x128xf32>
    %67 = arith.extf %64 : vector<8x128xbf16> to vector<8x128xf32>
    %68 = arith.addf %67, %66 : vector<8x128xf32>
    %69 = math.tanh %68 : vector<8x128xf32>
    %70 = vector.extract_strided_slice %69 {offsets = [0, 0], sizes = [8, 32], strides = [1, 1]} : vector<8x128xf32> to vector<8x32xf32>
    %cst_31 = arith.constant 5.000000e-01 : f32
    %71 = vector.broadcast %cst_31 : f32 to vector<8x32xf32>
    %72 = arith.mulf %71, %70 : vector<8x32xf32>
    %cst_32 = arith.constant 5.000000e-01 : f32
    %73 = vector.broadcast %cst_32 : f32 to vector<8x32xf32>
    %74 = arith.addf %72, %73 : vector<8x32xf32>
    %75 = vector.extract_strided_slice %69 {offsets = [0, 32], sizes = [8, 32], strides = [1, 1]} : vector<8x128xf32> to vector<8x32xf32>
    %cst_33 = arith.constant 5.000000e-01 : f32
    %76 = vector.broadcast %cst_33 : f32 to vector<8x32xf32>
    %77 = arith.mulf %76, %75 : vector<8x32xf32>
    %cst_34 = arith.constant 5.000000e-01 : f32
    %78 = vector.broadcast %cst_34 : f32 to vector<8x32xf32>
    %79 = arith.addf %77, %78 : vector<8x32xf32>
    %80 = vector.extract_strided_slice %69 {offsets = [0, 64], sizes = [8, 32], strides = [1, 1]} : vector<8x128xf32> to vector<8x32xf32>
    %81 = vector.extract_strided_slice %69 {offsets = [0, 96], sizes = [8, 32], strides = [1, 1]} : vector<8x128xf32> to vector<8x32xf32>
    %cst_35 = arith.constant 5.000000e-01 : f32
    %82 = vector.broadcast %cst_35 : f32 to vector<8x32xf32>
    %83 = arith.mulf %82, %81 : vector<8x32xf32>
    %cst_36 = arith.constant 5.000000e-01 : f32
    %84 = vector.broadcast %cst_36 : f32 to vector<8x32xf32>
    %85 = arith.addf %83, %84 : vector<8x32xf32>
    %86 = arith.mulf %79, %59 : vector<8x32xf32>
    %87 = arith.mulf %74, %80 : vector<8x32xf32>
    %88 = arith.addf %86, %87 : vector<8x32xf32>
    %89 = math.tanh %88 : vector<8x32xf32>
    %90 = arith.mulf %85, %89 : vector<8x32xf32>
    %91 = arith.truncf %90 : vector<8x32xf32> to vector<8x32xbf16>
    %c3 = arith.constant 3 : index
    %c0_37 = arith.constant 0 : index
    %c0_38 = arith.constant 0 : index
    %92 = vector.load %arg2[%c3, %c0_37, %c0_38] : memref<8x8x128xbf16, #tpu.memory_space<vmem>>, vector<1x8x128xbf16>
    %93 = vector.shape_cast %92 : vector<1x8x128xbf16> to vector<8x128xbf16>
    %c0_39 = arith.constant 0 : index
    %c0_40 = arith.constant 0 : index
    %94 = vector.load %arg3[%c0_39, %c0_40] : memref<32x128xbf16, #tpu.memory_space<vmem>>, vector<32x128xbf16>
    %cst_41 = arith.constant dense<0.000000e+00> : vector<8x128xf32>
    %95 = tpu.matmul %91, %94, %cst_41 {dimension_numbers = #tpu.dot_dimension_numbers<[1], [0], [0], [1], [0, 0, 1, 1], [], []>} : vector<8x32xbf16>, vector<32x128xbf16>, vector<8x128xf32> -> vector<8x128xf32>
    %96 = arith.extf %93 : vector<8x128xbf16> to vector<8x128xf32>
    %97 = arith.addf %96, %95 : vector<8x128xf32>
    %98 = math.tanh %97 : vector<8x128xf32>
    %99 = vector.extract_strided_slice %98 {offsets = [0, 0], sizes = [8, 32], strides = [1, 1]} : vector<8x128xf32> to vector<8x32xf32>
    %cst_42 = arith.constant 5.000000e-01 : f32
    %100 = vector.broadcast %cst_42 : f32 to vector<8x32xf32>
    %101 = arith.mulf %100, %99 : vector<8x32xf32>
    %cst_43 = arith.constant 5.000000e-01 : f32
    %102 = vector.broadcast %cst_43 : f32 to vector<8x32xf32>
    %103 = arith.addf %101, %102 : vector<8x32xf32>
    %104 = vector.extract_strided_slice %98 {offsets = [0, 32], sizes = [8, 32], strides = [1, 1]} : vector<8x128xf32> to vector<8x32xf32>
    %cst_44 = arith.constant 5.000000e-01 : f32
    %105 = vector.broadcast %cst_44 : f32 to vector<8x32xf32>
    %106 = arith.mulf %105, %104 : vector<8x32xf32>
    %cst_45 = arith.constant 5.000000e-01 : f32
    %107 = vector.broadcast %cst_45 : f32 to vector<8x32xf32>
    %108 = arith.addf %106, %107 : vector<8x32xf32>
    %109 = vector.extract_strided_slice %98 {offsets = [0, 64], sizes = [8, 32], strides = [1, 1]} : vector<8x128xf32> to vector<8x32xf32>
    %110 = vector.extract_strided_slice %98 {offsets = [0, 96], sizes = [8, 32], strides = [1, 1]} : vector<8x128xf32> to vector<8x32xf32>
    %cst_46 = arith.constant 5.000000e-01 : f32
    %111 = vector.broadcast %cst_46 : f32 to vector<8x32xf32>
    %112 = arith.mulf %111, %110 : vector<8x32xf32>
    %cst_47 = arith.constant 5.000000e-01 : f32
    %113 = vector.broadcast %cst_47 : f32 to vector<8x32xf32>
    %114 = arith.addf %112, %113 : vector<8x32xf32>
    %115 = arith.mulf %108, %88 : vector<8x32xf32>
    %116 = arith.mulf %103, %109 : vector<8x32xf32>
    %117 = arith.addf %115, %116 : vector<8x32xf32>
    %118 = math.tanh %117 : vector<8x32xf32>
    %119 = arith.mulf %114, %118 : vector<8x32xf32>
    %120 = arith.truncf %119 : vector<8x32xf32> to vector<8x32xbf16>
    %c4 = arith.constant 4 : index
    %c0_48 = arith.constant 0 : index
    %c0_49 = arith.constant 0 : index
    %121 = vector.load %arg2[%c4, %c0_48, %c0_49] : memref<8x8x128xbf16, #tpu.memory_space<vmem>>, vector<1x8x128xbf16>
    %122 = vector.shape_cast %121 : vector<1x8x128xbf16> to vector<8x128xbf16>
    %c0_50 = arith.constant 0 : index
    %c0_51 = arith.constant 0 : index
    %123 = vector.load %arg3[%c0_50, %c0_51] : memref<32x128xbf16, #tpu.memory_space<vmem>>, vector<32x128xbf16>
    %cst_52 = arith.constant dense<0.000000e+00> : vector<8x128xf32>
    %124 = tpu.matmul %120, %123, %cst_52 {dimension_numbers = #tpu.dot_dimension_numbers<[1], [0], [0], [1], [0, 0, 1, 1], [], []>} : vector<8x32xbf16>, vector<32x128xbf16>, vector<8x128xf32> -> vector<8x128xf32>
    %125 = arith.extf %122 : vector<8x128xbf16> to vector<8x128xf32>
    %126 = arith.addf %125, %124 : vector<8x128xf32>
    %127 = math.tanh %126 : vector<8x128xf32>
    %128 = vector.extract_strided_slice %127 {offsets = [0, 0], sizes = [8, 32], strides = [1, 1]} : vector<8x128xf32> to vector<8x32xf32>
    %cst_53 = arith.constant 5.000000e-01 : f32
    %129 = vector.broadcast %cst_53 : f32 to vector<8x32xf32>
    %130 = arith.mulf %129, %128 : vector<8x32xf32>
    %cst_54 = arith.constant 5.000000e-01 : f32
    %131 = vector.broadcast %cst_54 : f32 to vector<8x32xf32>
    %132 = arith.addf %130, %131 : vector<8x32xf32>
    %133 = vector.extract_strided_slice %127 {offsets = [0, 32], sizes = [8, 32], strides = [1, 1]} : vector<8x128xf32> to vector<8x32xf32>
    %cst_55 = arith.constant 5.000000e-01 : f32
    %134 = vector.broadcast %cst_55 : f32 to vector<8x32xf32>
    %135 = arith.mulf %134, %133 : vector<8x32xf32>
    %cst_56 = arith.constant 5.000000e-01 : f32
    %136 = vector.broadcast %cst_56 : f32 to vector<8x32xf32>
    %137 = arith.addf %135, %136 : vector<8x32xf32>
    %138 = vector.extract_strided_slice %127 {offsets = [0, 64], sizes = [8, 32], strides = [1, 1]} : vector<8x128xf32> to vector<8x32xf32>
    %139 = vector.extract_strided_slice %127 {offsets = [0, 96], sizes = [8, 32], strides = [1, 1]} : vector<8x128xf32> to vector<8x32xf32>
    %cst_57 = arith.constant 5.000000e-01 : f32
    %140 = vector.broadcast %cst_57 : f32 to vector<8x32xf32>
    %141 = arith.mulf %140, %139 : vector<8x32xf32>
    %cst_58 = arith.constant 5.000000e-01 : f32
    %142 = vector.broadcast %cst_58 : f32 to vector<8x32xf32>
    %143 = arith.addf %141, %142 : vector<8x32xf32>
    %144 = arith.mulf %137, %117 : vector<8x32xf32>
    %145 = arith.mulf %132, %138 : vector<8x32xf32>
    %146 = arith.addf %144, %145 : vector<8x32xf32>
    %147 = math.tanh %146 : vector<8x32xf32>
    %148 = arith.mulf %143, %147 : vector<8x32xf32>
    %149 = arith.truncf %148 : vector<8x32xf32> to vector<8x32xbf16>
    %c5 = arith.constant 5 : index
    %c0_59 = arith.constant 0 : index
    %c0_60 = arith.constant 0 : index
    %150 = vector.load %arg2[%c5, %c0_59, %c0_60] : memref<8x8x128xbf16, #tpu.memory_space<vmem>>, vector<1x8x128xbf16>
    %151 = vector.shape_cast %150 : vector<1x8x128xbf16> to vector<8x128xbf16>
    %c0_61 = arith.constant 0 : index
    %c0_62 = arith.constant 0 : index
    %152 = vector.load %arg3[%c0_61, %c0_62] : memref<32x128xbf16, #tpu.memory_space<vmem>>, vector<32x128xbf16>
    %cst_63 = arith.constant dense<0.000000e+00> : vector<8x128xf32>
    %153 = tpu.matmul %149, %152, %cst_63 {dimension_numbers = #tpu.dot_dimension_numbers<[1], [0], [0], [1], [0, 0, 1, 1], [], []>} : vector<8x32xbf16>, vector<32x128xbf16>, vector<8x128xf32> -> vector<8x128xf32>
    %154 = arith.extf %151 : vector<8x128xbf16> to vector<8x128xf32>
    %155 = arith.addf %154, %153 : vector<8x128xf32>
    %156 = math.tanh %155 : vector<8x128xf32>
    %157 = vector.extract_strided_slice %156 {offsets = [0, 0], sizes = [8, 32], strides = [1, 1]} : vector<8x128xf32> to vector<8x32xf32>
    %cst_64 = arith.constant 5.000000e-01 : f32
    %158 = vector.broadcast %cst_64 : f32 to vector<8x32xf32>
    %159 = arith.mulf %158, %157 : vector<8x32xf32>
    %cst_65 = arith.constant 5.000000e-01 : f32
    %160 = vector.broadcast %cst_65 : f32 to vector<8x32xf32>
    %161 = arith.addf %159, %160 : vector<8x32xf32>
    %162 = vector.extract_strided_slice %156 {offsets = [0, 32], sizes = [8, 32], strides = [1, 1]} : vector<8x128xf32> to vector<8x32xf32>
    %cst_66 = arith.constant 5.000000e-01 : f32
    %163 = vector.broadcast %cst_66 : f32 to vector<8x32xf32>
    %164 = arith.mulf %163, %162 : vector<8x32xf32>
    %cst_67 = arith.constant 5.000000e-01 : f32
    %165 = vector.broadcast %cst_67 : f32 to vector<8x32xf32>
    %166 = arith.addf %164, %165 : vector<8x32xf32>
    %167 = vector.extract_strided_slice %156 {offsets = [0, 64], sizes = [8, 32], strides = [1, 1]} : vector<8x128xf32> to vector<8x32xf32>
    %168 = vector.extract_strided_slice %156 {offsets = [0, 96], sizes = [8, 32], strides = [1, 1]} : vector<8x128xf32> to vector<8x32xf32>
    %cst_68 = arith.constant 5.000000e-01 : f32
    %169 = vector.broadcast %cst_68 : f32 to vector<8x32xf32>
    %170 = arith.mulf %169, %168 : vector<8x32xf32>
    %cst_69 = arith.constant 5.000000e-01 : f32
    %171 = vector.broadcast %cst_69 : f32 to vector<8x32xf32>
    %172 = arith.addf %170, %171 : vector<8x32xf32>
    %173 = arith.mulf %166, %146 : vector<8x32xf32>
    %174 = arith.mulf %161, %167 : vector<8x32xf32>
    %175 = arith.addf %173, %174 : vector<8x32xf32>
    %176 = math.tanh %175 : vector<8x32xf32>
    %177 = arith.mulf %172, %176 : vector<8x32xf32>
    %178 = arith.truncf %177 : vector<8x32xf32> to vector<8x32xbf16>
    %c6 = arith.constant 6 : index
    %c0_70 = arith.constant 0 : index
    %c0_71 = arith.constant 0 : index
    %179 = vector.load %arg2[%c6, %c0_70, %c0_71] : memref<8x8x128xbf16, #tpu.memory_space<vmem>>, vector<1x8x128xbf16>
    %180 = vector.shape_cast %179 : vector<1x8x128xbf16> to vector<8x128xbf16>
    %c0_72 = arith.constant 0 : index
    %c0_73 = arith.constant 0 : index
    %181 = vector.load %arg3[%c0_72, %c0_73] : memref<32x128xbf16, #tpu.memory_space<vmem>>, vector<32x128xbf16>
    %cst_74 = arith.constant dense<0.000000e+00> : vector<8x128xf32>
    %182 = tpu.matmul %178, %181, %cst_74 {dimension_numbers = #tpu.dot_dimension_numbers<[1], [0], [0], [1], [0, 0, 1, 1], [], []>} : vector<8x32xbf16>, vector<32x128xbf16>, vector<8x128xf32> -> vector<8x128xf32>
    %183 = arith.extf %180 : vector<8x128xbf16> to vector<8x128xf32>
    %184 = arith.addf %183, %182 : vector<8x128xf32>
    %185 = math.tanh %184 : vector<8x128xf32>
    %186 = vector.extract_strided_slice %185 {offsets = [0, 0], sizes = [8, 32], strides = [1, 1]} : vector<8x128xf32> to vector<8x32xf32>
    %cst_75 = arith.constant 5.000000e-01 : f32
    %187 = vector.broadcast %cst_75 : f32 to vector<8x32xf32>
    %188 = arith.mulf %187, %186 : vector<8x32xf32>
    %cst_76 = arith.constant 5.000000e-01 : f32
    %189 = vector.broadcast %cst_76 : f32 to vector<8x32xf32>
    %190 = arith.addf %188, %189 : vector<8x32xf32>
    %191 = vector.extract_strided_slice %185 {offsets = [0, 32], sizes = [8, 32], strides = [1, 1]} : vector<8x128xf32> to vector<8x32xf32>
    %cst_77 = arith.constant 5.000000e-01 : f32
    %192 = vector.broadcast %cst_77 : f32 to vector<8x32xf32>
    %193 = arith.mulf %192, %191 : vector<8x32xf32>
    %cst_78 = arith.constant 5.000000e-01 : f32
    %194 = vector.broadcast %cst_78 : f32 to vector<8x32xf32>
    %195 = arith.addf %193, %194 : vector<8x32xf32>
    %196 = vector.extract_strided_slice %185 {offsets = [0, 64], sizes = [8, 32], strides = [1, 1]} : vector<8x128xf32> to vector<8x32xf32>
    %197 = vector.extract_strided_slice %185 {offsets = [0, 96], sizes = [8, 32], strides = [1, 1]} : vector<8x128xf32> to vector<8x32xf32>
    %cst_79 = arith.constant 5.000000e-01 : f32
    %198 = vector.broadcast %cst_79 : f32 to vector<8x32xf32>
    %199 = arith.mulf %198, %197 : vector<8x32xf32>
    %cst_80 = arith.constant 5.000000e-01 : f32
    %200 = vector.broadcast %cst_80 : f32 to vector<8x32xf32>
    %201 = arith.addf %199, %200 : vector<8x32xf32>
    %202 = arith.mulf %195, %175 : vector<8x32xf32>
    %203 = arith.mulf %190, %196 : vector<8x32xf32>
    %204 = arith.addf %202, %203 : vector<8x32xf32>
    %205 = math.tanh %204 : vector<8x32xf32>
    %206 = arith.mulf %201, %205 : vector<8x32xf32>
    %207 = arith.truncf %206 : vector<8x32xf32> to vector<8x32xbf16>
    %c7 = arith.constant 7 : index
    %c0_81 = arith.constant 0 : index
    %c0_82 = arith.constant 0 : index
    %208 = vector.load %arg2[%c7, %c0_81, %c0_82] : memref<8x8x128xbf16, #tpu.memory_space<vmem>>, vector<1x8x128xbf16>
    %209 = vector.shape_cast %208 : vector<1x8x128xbf16> to vector<8x128xbf16>
    %c0_83 = arith.constant 0 : index
    %c0_84 = arith.constant 0 : index
    %210 = vector.load %arg3[%c0_83, %c0_84] : memref<32x128xbf16, #tpu.memory_space<vmem>>, vector<32x128xbf16>
    %cst_85 = arith.constant dense<0.000000e+00> : vector<8x128xf32>
    %211 = tpu.matmul %207, %210, %cst_85 {dimension_numbers = #tpu.dot_dimension_numbers<[1], [0], [0], [1], [0, 0, 1, 1], [], []>} : vector<8x32xbf16>, vector<32x128xbf16>, vector<8x128xf32> -> vector<8x128xf32>
    %212 = arith.extf %209 : vector<8x128xbf16> to vector<8x128xf32>
    %213 = arith.addf %212, %211 : vector<8x128xf32>
    %214 = math.tanh %213 : vector<8x128xf32>
    %215 = vector.extract_strided_slice %214 {offsets = [0, 0], sizes = [8, 32], strides = [1, 1]} : vector<8x128xf32> to vector<8x32xf32>
    %cst_86 = arith.constant 5.000000e-01 : f32
    %216 = vector.broadcast %cst_86 : f32 to vector<8x32xf32>
    %217 = arith.mulf %216, %215 : vector<8x32xf32>
    %cst_87 = arith.constant 5.000000e-01 : f32
    %218 = vector.broadcast %cst_87 : f32 to vector<8x32xf32>
    %219 = arith.addf %217, %218 : vector<8x32xf32>
    %220 = vector.extract_strided_slice %214 {offsets = [0, 32], sizes = [8, 32], strides = [1, 1]} : vector<8x128xf32> to vector<8x32xf32>
    %cst_88 = arith.constant 5.000000e-01 : f32
    %221 = vector.broadcast %cst_88 : f32 to vector<8x32xf32>
    %222 = arith.mulf %221, %220 : vector<8x32xf32>
    %cst_89 = arith.constant 5.000000e-01 : f32
    %223 = vector.broadcast %cst_89 : f32 to vector<8x32xf32>
    %224 = arith.addf %222, %223 : vector<8x32xf32>
    %225 = vector.extract_strided_slice %214 {offsets = [0, 64], sizes = [8, 32], strides = [1, 1]} : vector<8x128xf32> to vector<8x32xf32>
    %226 = vector.extract_strided_slice %214 {offsets = [0, 96], sizes = [8, 32], strides = [1, 1]} : vector<8x128xf32> to vector<8x32xf32>
    %cst_90 = arith.constant 5.000000e-01 : f32
    %227 = vector.broadcast %cst_90 : f32 to vector<8x32xf32>
    %228 = arith.mulf %227, %226 : vector<8x32xf32>
    %cst_91 = arith.constant 5.000000e-01 : f32
    %229 = vector.broadcast %cst_91 : f32 to vector<8x32xf32>
    %230 = arith.addf %228, %229 : vector<8x32xf32>
    %231 = arith.mulf %224, %204 : vector<8x32xf32>
    %232 = arith.mulf %219, %225 : vector<8x32xf32>
    %233 = arith.addf %231, %232 : vector<8x32xf32>
    %234 = math.tanh %233 : vector<8x32xf32>
    %235 = arith.mulf %230, %234 : vector<8x32xf32>
    %236 = arith.truncf %235 : vector<8x32xf32> to vector<8x32xbf16>
    %c0_92 = arith.constant 0 : index
    %c0_93 = arith.constant 0 : index
    %237 = vector.load %arg8[%c0_92, %c0_93] : memref<8x32xbf16, #tpu.memory_space<vmem>>, vector<8x32xbf16>
    tpu.vector_store %arg8[%c0_92, %c0_93], %236 {strides = array<i32>} : memref<8x32xbf16, #tpu.memory_space<vmem>>, vector<8x32xbf16>,
    %c0_94 = arith.constant 0 : index
    %c0_95 = arith.constant 0 : index
    %238 = vector.load %arg9[%c0_94, %c0_95] : memref<8x32xf32, #tpu.memory_space<vmem>>, vector<8x32xf32>
    tpu.vector_store %arg9[%c0_94, %c0_95], %233 {strides = array<i32>} : memref<8x32xf32, #tpu.memory_space<vmem>>, vector<8x32xf32>,
    %c1_i32 = arith.constant 1 : i32
    %239 = arith.cmpi eq, %arg1, %c1_i32 : i32
    %240 = arith.extui %239 : i1 to i32
    %c0_i32_96 = arith.constant 0 : i32
    %241 = arith.cmpi ne, %240, %c0_i32_96 : i32
    scf.if %241 {
      %c0_97 = arith.constant 0 : index
      %c0_98 = arith.constant 0 : index
      %242 = vector.load %arg4[%c0_97, %c0_98] : memref<32x16xbf16, #tpu.memory_space<vmem>>, vector<32x16xbf16>
      %cst_99 = arith.constant dense<0.000000e+00> : vector<8x16xf32>
      %243 = tpu.matmul %236, %242, %cst_99 {dimension_numbers = #tpu.dot_dimension_numbers<[1], [0], [0], [1], [0, 0, 1, 1], [], []>} : vector<8x32xbf16>, vector<32x16xbf16>, vector<8x16xf32> -> vector<8x16xf32>
      %c0_100 = arith.constant 0 : index
      %c0_101 = arith.constant 0 : index
      %244 = vector.load %arg5[%c0_100, %c0_101] : memref<1x16xf32, #tpu.memory_space<vmem>>, vector<1x16xf32>
      %245 = vector.broadcast %244 : vector<1x16xf32> to vector<8x16xf32>
      %246 = arith.addf %243, %245 : vector<8x16xf32>
      %247 = vector.extract_strided_slice %246 {offsets = [0, 0], sizes = [8, 8], strides = [1, 1]} : vector<8x16xf32> to vector<8x8xf32>
      %248 = vector.extract_strided_slice %246 {offsets = [0, 8], sizes = [8, 8], strides = [1, 1]} : vector<8x16xf32> to vector<8x8xf32>
      %cst_102 = arith.constant 5.000000e-01 : f32
      %249 = vector.broadcast %cst_102 : f32 to vector<8x8xf32>
      %250 = arith.mulf %249, %248 : vector<8x8xf32>
      %251 = math.exp %250 : vector<8x8xf32>
      %c0_103 = arith.constant 0 : index
      %c0_104 = arith.constant 0 : index
      %252 = vector.load %arg6[%c0_103, %c0_104] : memref<8x8xf32, #tpu.memory_space<vmem>>, vector<8x8xf32>
      %253 = arith.mulf %251, %252 : vector<8x8xf32>
      %254 = arith.addf %247, %253 : vector<8x8xf32>
      %c0_105 = arith.constant 0 : index
      %c8 = arith.constant 8 : index
      %255 = vector.load %arg7[%c0_105, %c8] : memref<8x24xf32, #tpu.memory_space<vmem>>, vector<8x16xf32>
      tpu.vector_store %arg7[%c0_105, %c8], %246 {strides = array<i32>} : memref<8x24xf32, #tpu.memory_space<vmem>>, vector<8x16xf32>,
      %c0_106 = arith.constant 0 : index
      %c0_107 = arith.constant 0 : index
      %256 = vector.load %arg7[%c0_106, %c0_107] : memref<8x24xf32, #tpu.memory_space<vmem>>, vector<8x8xf32>
      tpu.vector_store %arg7[%c0_106, %c0_107], %254 {strides = array<i32>} : memref<8x24xf32, #tpu.memory_space<vmem>>, vector<8x8xf32>,
    } else {
    }
    return
  }
  func.func @transform_0(%arg0: i32, %arg1: i32) -> (i32, i32, i32) {
    %c0_i32 = arith.constant 0 : i32
    %c0_i32_0 = arith.constant 0 : i32
    return %arg1, %arg0, %c0_i32 : i32, i32, i32
  }
  func.func @transform_1(%arg0: i32, %arg1: i32) -> (i32, i32) {
    %c0_i32 = arith.constant 0 : i32
    %c0_i32_0 = arith.constant 0 : i32
    %c0_i32_1 = arith.constant 0 : i32
    return %c0_i32, %c0_i32_0 : i32, i32
  }
  func.func @transform_2(%arg0: i32, %arg1: i32) -> (i32, i32) {
    %c0_i32 = arith.constant 0 : i32
    %c0_i32_0 = arith.constant 0 : i32
    %c0_i32_1 = arith.constant 0 : i32
    return %c0_i32, %c0_i32_0 : i32, i32
  }
  func.func @transform_3(%arg0: i32, %arg1: i32) -> (i32, i32) {
    %c0_i32 = arith.constant 0 : i32
    %c0_i32_0 = arith.constant 0 : i32
    %c0_i32_1 = arith.constant 0 : i32
    return %c0_i32, %c0_i32_0 : i32, i32
  }
  func.func @transform_4(%arg0: i32, %arg1: i32) -> (i32, i32) {
    %c0_i32 = arith.constant 0 : i32
    %c0_i32_0 = arith.constant 0 : i32
    return %arg0, %c0_i32 : i32, i32
  }
  func.func @transform_5(%arg0: i32, %arg1: i32) -> (i32, i32) {
    %c0_i32 = arith.constant 0 : i32
    %c0_i32_0 = arith.constant 0 : i32
    return %arg0, %c0_i32 : i32, i32
  }
}

</mosaic_0001>

<bundles_post_ra>
// kernel: tpu_custom_call.1
= control target key start
LH: loop header
LB: loop body
LE: loop exit
PB: predicated region body
PF: predicated region fallthrough
CT: control target
= control target key end

     0   :  { %10 = vsyncpa [#allocation5], 0  ;;  %s1739_s0 = inlined_call_operand.hbm [shape: bf16[16,8,128], index: 0, kind: input, shape index: {}]   ;;  %s1740_s1 = inlined_call_operand.vmem [shape: bf16[32,128], index: 1, kind: input, shape index: {}]   ;;  %s1741_s2 = inlined_call_operand.vmem [shape: bf16[32,16], index: 2, kind: input, shape index: {}]   ;;  %s1742_s3 = inlined_call_operand.vmem [shape: f32[1,16], index: 3, kind: input, shape index: {}]   ;;  %s1743_s4 = inlined_call_operand.vmem [shape: f32[8,8], index: 4, kind: input, shape index: {}]   ;;  %s1744_s5 = inlined_call_operand.hbm [shape: f32[8,24], index: 5, kind: output, shape index: {}]  }
   0x1   :  { %12 = vsyncpa [#allocation5 + $0x1], 0 }
   0x2   :  { %13 = vsyncpa [#allocation6], 0  ;;  %s1469_s18 = smov 0   ;;  %s1471_s19 = smov 0  }
   0x3   :  { %s1473_s20 = smov 0   ;;  %s1475_s21 = smov 0  }
   0x4   :  { %s1477_s22 = smov 0   ;;  %s1479_s23 = smov 0  }
   0x5 LB: > { %s1059_s24 = sadd.s32 4294967295, %s1421_s23   ;;  %s28_s25 = sadd.s32 1, %s1417_s22  ;;  %s1421_s23 = sphi %s1479_s23, %s19_s23   ;;  %s1417_s22 = sphi %s1477_s22, %s1753_s22   ;;  %s1413_s21 = sphi %s1475_s21, %s1752_s21   ;;  %s1409_s20 = sphi %s1473_s20, %s1751_s20   ;;  %s1405_s19 = sphi %s1471_s19, %s1750_s19   ;;  %s1401_s18 = sphi %s1469_s18, %s1749_s18  }
   0x6   : > { %p29_p0 = scmp.ge.s32.totalorder %s28_s25, 2  ;;  %s40_s26 = sadd.s32 1, %s1409_s20 }
   0x7   : > { %p47_p1 = scmp.ne.s32.totalorder %s1409_s20, %s1405_s19  ;;  %p48_p2 = scmp.eq.s32.totalorder %s1421_s23, 0 }
   0x8   : > { %s1755_s25 = smov (%p29_p0, %s28_s25), 0  ;;  %p53_p4 = scmp.ne.s32.totalorder %s1405_s19, %s1401_s18 }
   0x9   : > { %p1505_p3 = por %p48_p2, %p47_p1  ;;  %s35_s28 = ssub.s32 %s1417_s22, %s1755_s25 }
   0xa   : > { %p54_p5 = scmp.eq.s32.totalorder %s1059_s24, 0  ;;  %p38_p6 = scmp.eq.s32.totalorder %s35_s28, 0 }
   0xb   : > { %p1207_p8 = scmp.lt.s32.totalorder %s1421_s23, 2  ;;  %s208_s6 = sand.u32 1, %s1409_s20  }
   0xc   : > { %p1514_p7 = por %p54_p5, %p53_p4  ;;  %s1096_s7 = sshll.u32 %s1417_s22, 9 }
   0xd   : > { %s1520_s30 = scalar_select %p38_p6, %s1409_s20, %s40_s26  }
   0xe   : > { %s1063_s8 = sshll.u32 %s208_s6, 5  ;;  %s1527_s11 = scalar_lea.hbm %s1739_s0, %s1096_s7 }
   0xf   : > { %s212_s12 = scalar_lea.vmem [#allocation4], %s1063_s8  ;;  %p1531_p9 = pnand %p1207_p8, %p1505_p3 }
  0x10   : > { %s220_s13 = sshll.u32 %s212_s12, 4  ;;  %s1537_s15 = scalar_lea.sflag [#allocation5], %s208_s6  ;;  %s1535_s13 = int_to_ptr.vmem [resolvable:$true] %s220_s13 }
  0x11   : > { %s1311_s16 = scalar_lea.hbm %s1527_s11, 512  ;;  %p1313_p11 = pneg %p1531_p9 }
  0x12   : > { %p1312_p10 = scmp.ne.s32.totalorder %s1527_s11, %s1311_s16  ;;  %s1316_s26 = scalar_lea.hbm %s1739_s0, 1024 }
  0x13   : > { %p1317_p0 = scmp.lt.u32.totalorder %s1527_s11, %s1739_s0  ;;  %p1318_p1 = scmp.lt.u32.totalorder %s1316_s26, %s1311_s16 }
  0x14   : > { %p1314_p12 = pnand %p1313_p11, %p1312_p10  ;;  %p1320_p3 = scmp.lt.u32.totalorder %s1311_s16, %s1527_s11 }
  0x15   : > { %p1319_p2 = por %p1318_p1, %p1317_p0 }
  0x16   : > { %p1315_p13 = pneg %p1314_p12 }
  0x17   : > { %p1321_p4 = por %p1320_p3, %p1319_p2 }
  0x19   : > { %p1322_p5 = pnand %p1321_p4, %p1315_p13 }
  0x1b   : > { %1325 = shalt.err (!%p1322_p5)
}
  0x1c   : > { %s1326_s6 = scalar_lea.vmem %s1535_s13, 512  ;;  %s1423_s7 = smov [#allocation4]  }
  0x1d   : > { %p1327_p6 = scmp.ne.s32.totalorder %s1535_s13, %s1326_s6  ;;  %s1331_s8 = sshll.u32 %s1423_s7, 4  ;;  %s1332_s8 = int_to_ptr.vmem [resolvable:$false] %s1331_s8 }
  0x1e   : > { %s1333_s9 = scalar_lea.vmem %s1332_s8, 1024  ;;  %p1334_p12 = scmp.lt.s32.totalorder %s1535_s13, %s1332_s8 }
  0x1f   : > { %p1329_p8 = pnand %p1327_p6, %p1313_p11  ;;  %p1335_p0 = scmp.lt.s32.totalorder %s1333_s9, %s1326_s6 }
  0x21   : > { %p1330_p10 = pneg %p1329_p8  ;;  %p1336_p1 = por %p1335_p0, %p1334_p12 }
  0x23   : > { %p1337_p2 = pnand %p1336_p1, %p1330_p10 }
  0x25   : > { %1340 = shalt.err (!%p1337_p2)
}
  0x26   : > { %s1424_s10 = smov 64   ;;  %s1425_s12 = smov 4  }
  0x27   : > { %1206 = dma.hbm_to_vmem [thread:$0]  (!%p1531_p9), %s1527_s11, 512, %s1535_s13, %s1537_s15, %s1424_s10, %s1424_s10, %s1425_s12  }
  0x28   : > { %p1066_p11 = scmp.ge.s32.totalorder %s1421_s23, 1  ;;  %p228_p13 = scmp.lt.s32.totalorder %s1421_s23, 3 }
  0x2a   : > { %p229_p3 = pnand %p1066_p11, %p228_p13 }
  0x2b   : > { %s234_s16 = sand.u32 (!%p229_p3), 1, %s1405_s19  }
  0x2c   : > { %232 = sbr.rel (%p229_p3) target bundleno = 6083 (0x17c3), region = 40  ;;  %s1067_s17 = sshll.u32 (!%p229_p3), %s234_s16, 5 }
  0x2d   : > { %s235_s18 = scalar_lea.sflag (!%p229_p3), [#allocation5], %s234_s16  ;;  %s1568_s26 = scalar_lea.vmem (!%p229_p3), [#allocation4], %s1067_s17 }
  0x33   : > { %1392 = dma.done.wait (%p1514_p7), %s235_s18, 512  }
  0x34   : > { %1394 = vsyncadd (%p1514_p7), %s235_s18, 4294966784  ;;  %p1068_p4 = scmp.ne.s32.totalorder %s1413_s21, 0 }
  0x35   : > { %vm274_vm0 = vcmask (!%p1068_p4), 257024   ;;  %vm276_vm1 = vcmask (!%p1068_p4), 261120   ;;  %v1426_v0 = vmov (!%p1068_p4), 0   ;;  %v1427_v1 = vmov (!%p1068_p4), 0.0  }
  0x36   : > { %273 = sbr.rel (%p1068_p4) target bundleno = 61 (0x3d), region = 48  ;;  %275 = vst.msk [vmem:[#allocation2] sm:$0xf] (!%p1068_p4), %vm274_vm0, %v1426_v0 }
  0x37   : > { %277 = vst.msk [vmem:[#allocation3] sm:$0xff] (!%p1068_p4), %vm276_vm1, %v1427_v1 }
  0x3d PF: > { %v1578_v2 = vld [vmem:[%s1740_s1] sm:$0xff]   ;;  %v1428_v3 = vmov 0.0   ;;  %v1586_v4 = vld [vmem:[%s1740_s1 + $0x8] sm:$0xff]   ;;  %vm1429_vm2 = vmmov 0   ;;  %vm297_vm3 = vcmask 261120   ;;  %s1430_s15 = smov 64  }
  0x3e   : > { %1125 = vmatprep.subr.bf16.mxu0 %v1428_v3  ;;  %1133 = vmatprep.subr.bf16.mxu1 %v1428_v3  ;;  %v278_v5 = vld [vmem:[#allocation2] sm:$0xf]  ;;  %v280_v6 = vld [vmem:[%s1568_s26] sm:$0xff]   ;;  %v279_v14 = vld [vmem:[#allocation3] sm:$0xff]  ;;  %s1431_s27 = smov 32   ;;  %s1432_s28 = smov 96  }
  0x3f   : > { %1126 = vmatpush3.bf16.msra.mxu0 %v1578_v2  ;;  %1129 = vmatprep.mubr.msk.bf16.mxu0 %vm1429_vm2, %v1428_v3  ;;  %v341_v7 = vunpack.c.l.bf16 %v280_v6  ;;  %v416_v28 = vunpack.c.h.bf16 %v280_v6  ;;  %v1074_v47 = vld [vmem:[%s1568_s26 + $0x8] sm:$0xff]   ;;  %vm871_vm4 = vcmask 257024   ;;  %p1087_p7 = scmp.ne.s32.totalorder %s1413_s21, 1 }
  0x40   : > { %1127 = vmatprep.subr.bf16.mxu0 %v1428_v3  ;;  %1134 = vmatpush3.bf16.msra.mxu1 %v1578_v2  ;;  %v487_v48 = vunpack.c.l.bf16 %v1074_v47  ;;  %v558_v6 = vunpack.c.h.bf16 %v1074_v47  ;;  %s1433_s6 = smov (!%p1087_p7), 32   ;;  %vm1435_vm5 = vmmov (!%p1087_p7), 0   ;;  %s1436_s21 = smov (!%p1087_p7), 8   ;;  %vm968_vm6 = vcmask (!%p1087_p7), 195648  }
  0x41   : > { %1135 = vmatprep.subr.bf16.mxu1 %v1428_v3  ;;  %1137 = vmatprep.mubr.msk.bf16.mxu1 %vm1429_vm2, %v1428_v3  ;;  %vm970_vm7 = vcmask (!%p1087_p7), 64512  }
  0x43   : > { %1128 = vmatpush3.bf16.msra.mxu0 %v1586_v4 }
  0x44   : > { %1136 = vmatpush3.bf16.msra.mxu1 %v1586_v4  ;;  %1141 = vmatprep.subr.bf16.mxu0 %v1428_v3 }
  0x45   : > { %1149 = vmatprep.subr.bf16.mxu1 %v1428_v3 }
  0x46   : > { %1130 = vmatmul.mubr.msk.bf16.vlgmr.msra.gmra.mrb[0].mxu0 %vm297_vm3, %v278_v5 }
  0x47   : > { %1142 = vmatpush3.bf16.msra.mxu0 %v1578_v2  ;;  %1145 = vmatprep.mubr.msk.bf16.mxu0 %vm1429_vm2, %v1428_v3 }
  0x48   : > { %1143 = vmatprep.subr.bf16.mxu0 %v1428_v3 }
  0x4b   : > { %1144 = vmatpush3.bf16.msra.mxu0 %v1586_v4 }
  0x4c   : > { %1157 = vmatprep.subr.bf16.mxu0 %v1428_v3 }
 0x119   : > { %v335_v8 = vpop.f32.mrb[0].mxu0 }
 0x11a   : > { %v342_v9 = vadd.f32 %v341_v7, %v335_v8  ;;  %v1131_v10 = vpop.f32.mrb[1].mxu0 }
 0x11b   : > { %v338_v11 = vpop.f32.mrb[2].mxu0 }
 0x11c   : > { %1275 = vtanh.f32 %v342_v9  ;;  %v1132_v12 = vpop.f32.mrb[3].mxu0 }
 0x126   : > { %v1276_v13 = vpop.eup %1275 }
 0x127   : > { %352 = vrot.lane.b32.xlu0 %v1276_v13, %s1430_s15  ;;  %v344_v15 = vmul.f32 0.5, %v1276_v13 }
 0x129   : > { %v345_v16 = vadd.f32 0.5, %v344_v15 }
 0x12b   : > { %347 = vrot.lane.b32.xlu0 %v279_v14, %s1431_s27 }
 0x199   : > { %v353_v17 = vpop.permute.xlu0 %352 }
 0x19a   : > { %v355_v18 = vmul.f32 %v353_v17, %v345_v16 }
 0x19c   : > { %357 = vrot.lane.b32.xlu1 %v355_v18, %s1431_s27 }
 0x19d   : > { %v348_v19 = vpop.permute.xlu0 %347 }
 0x19e   : > { %v350_v20 = vmul.f32 %v348_v19, %v345_v16 }
 0x20e   : > { %v358_v21 = vpop.permute.xlu1 %357 }
 0x20f   : > { %v360_v22 = vadd.f32 %v358_v21, %v350_v20 }
 0x211   : > { %1277 = vtanh.f32 %v360_v22 }
 0x21b   : > { %v1278_v23 = vpop.eup %1277 }
 0x21c   : > { %363 = vrot.lane.b32.xlu1 %v1278_v23, %s1430_s15 }
 0x28e   : > { %v364_v24 = vpop.permute.xlu1 %363 }
 0x28f   : > { %v366_v25 = vmul.f32 %v364_v24, %v345_v16 }
 0x291   : > { %v367_v26 = vpack.c.bf16 %v366_v25, %v366_v25  ;;  %v1078_v25 = vld [vmem:[%s1568_s26 + $0x10] sm:$0xff]  }
 0x293   : > { %371 = vrot.lane.b32.xlu0 %v367_v26, %s1431_s27  ;;  %v629_v26 = vunpack.c.l.bf16 %v1078_v25 }
 0x305   : > { %v372_v27 = vpop.permute.xlu0 %371 }
 0x306   : > { %1138 = vmatmul.mubr.msk.bf16.vlgmr.msra.gmra.mrb[0].mxu1 %vm297_vm3, %v372_v27 }
 0x307   : > { %1150 = vmatpush3.bf16.msra.mxu1 %v1578_v2  ;;  %1153 = vmatprep.mubr.msk.bf16.mxu1 %vm1429_vm2, %v1428_v3 }
 0x308   : > { %1151 = vmatprep.subr.bf16.mxu1 %v1428_v3 }
 0x30b   : > { %1152 = vmatpush3.bf16.msra.mxu1 %v1586_v4 }
 0x30c   : > { %1165 = vmatprep.subr.bf16.mxu1 %v1428_v3 }
 0x3d9   : > { %v410_v29 = vpop.f32.mrb[0].mxu1 }
 0x3da   : > { %v417_v30 = vadd.f32 %v416_v28, %v410_v29  ;;  %v1139_v31 = vpop.f32.mrb[1].mxu1 }
 0x3db   : > { %v413_v32 = vpop.f32.mrb[2].mxu1 }
 0x3dc   : > { %1279 = vtanh.f32 %v417_v30  ;;  %v1140_v33 = vpop.f32.mrb[3].mxu1 }
 0x3e6   : > { %v1280_v34 = vpop.eup %1279 }
 0x3e7   : > { %423 = vrot.lane.b32.xlu1 %v1280_v34, %s1430_s15  ;;  %v419_v35 = vmul.f32 0.5, %v1280_v34 }
 0x3e9   : > { %v420_v36 = vadd.f32 0.5, %v419_v35 }
 0x3eb   : > { %v421_v39 = vmul.f32 %v420_v36, %v360_v22 }
 0x459   : > { %v424_v37 = vpop.permute.xlu1 %423 }
 0x45a   : > { %v426_v38 = vmul.f32 %v424_v37, %v420_v36 }
 0x45c   : > { %428 = vrot.lane.b32.xlu0 %v426_v38, %s1431_s27 }
 0x4ce   : > { %v429_v40 = vpop.permute.xlu0 %428 }
 0x4cf   : > { %v431_v41 = vadd.f32 %v429_v40, %v421_v39 }
 0x4d1   : > { %1281 = vtanh.f32 %v431_v41 }
 0x4db   : > { %v1282_v42 = vpop.eup %1281 }
 0x4dc   : > { %434 = vrot.lane.b32.xlu1 %v1282_v42, %s1430_s15 }
 0x54e   : > { %v435_v43 = vpop.permute.xlu1 %434 }
 0x54f   : > { %v437_v44 = vmul.f32 %v435_v43, %v420_v36 }
 0x551   : > { %v438_v45 = vpack.c.bf16 %v437_v44, %v437_v44 }
 0x553   : > { %442 = vrot.lane.b32.xlu0 %v438_v45, %s1431_s27  ;;  %v700_v45 = vunpack.c.h.bf16 %v1078_v25 }
 0x5c5   : > { %v443_v46 = vpop.permute.xlu0 %442 }
 0x5c6   : > { %1146 = vmatmul.mubr.msk.bf16.vlgmr.msra.gmra.mrb[4].mxu0 %vm297_vm3, %v443_v46 }
 0x5c7   : > { %1158 = vmatpush3.bf16.msra.mxu0 %v1578_v2  ;;  %1161 = vmatprep.mubr.msk.bf16.mxu0 %vm1429_vm2, %v1428_v3 }
 0x5c8   : > { %1159 = vmatprep.subr.bf16.mxu0 %v1428_v3 }
 0x5cb   : > { %1160 = vmatpush3.bf16.msra.mxu0 %v1586_v4 }
 0x5cc   : > { %1173 = vmatprep.subr.bf16.mxu0 %v1428_v3 }
 0x699   : > { %v481_v49 = vpop.f32.mrb[4].mxu0 }
 0x69a   : > { %v488_v50 = vadd.f32 %v487_v48, %v481_v49  ;;  %v1147_v51 = vpop.f32.mrb[5].mxu0 }
 0x69b   : > { %v484_v52 = vpop.f32.mrb[6].mxu0 }
 0x69c   : > { %1283 = vtanh.f32 %v488_v50  ;;  %v1148_v53 = vpop.f32.mrb[7].mxu0 }
 0x6a6   : > { %v1284_v54 = vpop.eup %1283 }
 0x6a7   : > { %494 = vrot.lane.b32.xlu1 %v1284_v54, %s1430_s15  ;;  %v490_v55 = vmul.f32 0.5, %v1284_v54 }
 0x6a9   : > { %v491_v56 = vadd.f32 0.5, %v490_v55 }
 0x6ab   : > { %v492_v59 = vmul.f32 %v491_v56, %v431_v41 }
 0x719   : > { %v495_v57 = vpop.permute.xlu1 %494 }
 0x71a   : > { %v497_v58 = vmul.f32 %v495_v57, %v491_v56 }
 0x71c   : > { %499 = vrot.lane.b32.xlu0 %v497_v58, %s1431_s27 }
 0x78e   : > { %v500_v60 = vpop.permute.xlu0 %499 }
 0x78f   : > { %v502_v61 = vadd.f32 %v500_v60, %v492_v59 }
 0x791   : > { %1285 = vtanh.f32 %v502_v61 }
 0x79b   : > { %v1286_v62 = vpop.eup %1285 }
 0x79c   : > { %505 = vrot.lane.b32.xlu1 %v1286_v62, %s1430_s15 }
 0x80e   : > { %v506_v63 = vpop.permute.xlu1 %505 }
 0x80f   : > { %v508_v0 = vmul.f32 %v506_v63, %v491_v56 }
 0x811   : > { %v509_v1 = vpack.c.bf16 %v508_v0, %v508_v0 }
 0x813   : > { %513 = vrot.lane.b32.xlu0 %v509_v1, %s1431_s27 }
 0x885   : > { %v514_v5 = vpop.permute.xlu0 %513 }
 0x886   : > { %1154 = vmatmul.mubr.msk.bf16.vlgmr.msra.gmra.mrb[4].mxu1 %vm297_vm3, %v514_v5 }
 0x887   : > { %1166 = vmatpush3.bf16.msra.mxu1 %v1578_v2  ;;  %1169 = vmatprep.mubr.msk.bf16.mxu1 %vm1429_vm2, %v1428_v3 }
 0x888   : > { %1167 = vmatprep.subr.bf16.mxu1 %v1428_v3 }
 0x88b   : > { %1168 = vmatpush3.bf16.msra.mxu1 %v1586_v4 }
 0x88c   : > { %1181 = vmatprep.subr.bf16.mxu1 %v1428_v3 }
 0x959   : > { %v552_v7 = vpop.f32.mrb[4].mxu1 }
 0x95a   : > { %v559_v8 = vadd.f32 %v558_v6, %v552_v7  ;;  %v1155_v9 = vpop.f32.mrb[5].mxu1 }
 0x95b   : > { %v555_v10 = vpop.f32.mrb[6].mxu1 }
 0x95c   : > { %1287 = vtanh.f32 %v559_v8  ;;  %v1156_v11 = vpop.f32.mrb[7].mxu1 }
 0x966   : > { %v1288_v12 = vpop.eup %1287 }
 0x967   : > { %565 = vrot.lane.b32.xlu1 %v1288_v12, %s1430_s15  ;;  %v561_v13 = vmul.f32 0.5, %v1288_v12 }
 0x969   : > { %v562_v14 = vadd.f32 0.5, %v561_v13 }
 0x96b   : > { %v563_v17 = vmul.f32 %v562_v14, %v502_v61  ;;  %v1082_v61 = vld [vmem:[%s1568_s26 + $0x18] sm:$0xff]   ;;  %s1437_s26 = smov (!%p1087_p7), 120  }
 0x96c   : > { %v771_v62 = vunpack.c.l.bf16 %v1082_v61 }
 0x9d9   : > { %v566_v15 = vpop.permute.xlu1 %565 }
 0x9da   : > { %v568_v16 = vmul.f32 %v566_v15, %v562_v14 }
 0x9dc   : > { %570 = vrot.lane.b32.xlu0 %v568_v16, %s1431_s27 }
 0xa4e   : > { %v571_v18 = vpop.permute.xlu0 %570 }
 0xa4f   : > { %v573_v19 = vadd.f32 %v571_v18, %v563_v17 }
 0xa51   : > { %1289 = vtanh.f32 %v573_v19 }
 0xa5b   : > { %v1290_v20 = vpop.eup %1289 }
 0xa5c   : > { %576 = vrot.lane.b32.xlu1 %v1290_v20, %s1430_s15  ;;  %v842_v20 = vunpack.c.h.bf16 %v1082_v61 }
 0xace   : > { %v577_v21 = vpop.permute.xlu1 %576 }
 0xacf   : > { %v579_v22 = vmul.f32 %v577_v21, %v562_v14 }
 0xad1   : > { %v580_v23 = vpack.c.bf16 %v579_v22, %v579_v22 }
 0xad3   : > { %584 = vrot.lane.b32.xlu0 %v580_v23, %s1431_s27 }
 0xb45   : > { %v585_v24 = vpop.permute.xlu0 %584 }
 0xb46   : > { %1162 = vmatmul.mubr.msk.bf16.vlgmr.msra.gmra.mrb[8].mxu0 %vm297_vm3, %v585_v24 }
 0xb47   : > { %1174 = vmatpush3.bf16.msra.mxu0 %v1578_v2  ;;  %1177 = vmatprep.mubr.msk.bf16.mxu0 %vm1429_vm2, %v1428_v3 }
 0xb48   : > { %1175 = vmatprep.subr.bf16.mxu0 %v1428_v3 }
 0xb4b   : > { %1176 = vmatpush3.bf16.msra.mxu0 %v1586_v4 }
 0xc19   : > { %v623_v27 = vpop.f32.mrb[8].mxu0 }
 0xc1a   : > { %v630_v28 = vadd.f32 %v629_v26, %v623_v27  ;;  %v1163_v29 = vpop.f32.mrb[9].mxu0 }
 0xc1b   : > { %v626_v30 = vpop.f32.mrb[10].mxu0 }
 0xc1c   : > { %1291 = vtanh.f32 %v630_v28  ;;  %v1164_v31 = vpop.f32.mrb[11].mxu0 }
 0xc26   : > { %v1292_v32 = vpop.eup %1291 }
 0xc27   : > { %636 = vrot.lane.b32.xlu1 %v1292_v32, %s1430_s15  ;;  %v632_v33 = vmul.f32 0.5, %v1292_v32 }
 0xc29   : > { %v633_v34 = vadd.f32 0.5, %v632_v33 }
 0xc2b   : > { %v634_v37 = vmul.f32 %v633_v34, %v573_v19 }
 0xc99   : > { %v637_v35 = vpop.permute.xlu1 %636 }
 0xc9a   : > { %v639_v36 = vmul.f32 %v637_v35, %v633_v34 }
 0xc9c   : > { %641 = vrot.lane.b32.xlu0 %v639_v36, %s1431_s27 }
 0xd0e   : > { %v642_v38 = vpop.permute.xlu0 %641 }
 0xd0f   : > { %v644_v39 = vadd.f32 %v642_v38, %v634_v37 }
 0xd11   : > { %1293 = vtanh.f32 %v644_v39 }
 0xd1b   : > { %v1294_v40 = vpop.eup %1293 }
 0xd1c   : > { %647 = vrot.lane.b32.xlu1 %v1294_v40, %s1430_s15  ;;  %v1434_v40 = vmov (!%p1087_p7), 0.0  }
 0xd1d   : > { %1189 = vmatprep.subr.bf16.mxu0 (!%p1087_p7), %v1434_v40 }
 0xd8e   : > { %v648_v41 = vpop.permute.xlu1 %647 }
 0xd8f   : > { %v650_v42 = vmul.f32 %v648_v41, %v633_v34  ;;  %v1307_v41 = vld [vmem:[%s1741_s2] sm:$0xff] (!%p1087_p7)  }
 0xd91   : > { %v651_v43 = vpack.c.bf16 %v650_v42, %v650_v42  ;;  %v953_v42 = vld [vmem:[%s1743_s4] sm:$0xff] (!%p1087_p7) }
 0xd93   : > { %655 = vrot.lane.b32.xlu0 %v651_v43, %s1431_s27  ;;  %v1308_v43 = vld [vmem:[%s1741_s2 + $0x8] sm:$0xff] (!%p1087_p7)  }
 0xe05   : > { %v656_v44 = vpop.permute.xlu0 %655 }
 0xe06   : > { %1170 = vmatmul.mubr.msk.bf16.vlgmr.msra.gmra.mrb[8].mxu1 %vm297_vm3, %v656_v44 }
 0xe07   : > { %1182 = vmatpush3.bf16.msra.mxu1 %v1578_v2  ;;  %1185 = vmatprep.mubr.msk.bf16.mxu1 %vm1429_vm2, %v1428_v3 }
 0xe08   : > { %1183 = vmatprep.subr.bf16.mxu1 %v1428_v3 }
 0xe0b   : > { %1184 = vmatpush3.bf16.msra.mxu1 %v1586_v4 }
 0xed9   : > { %v694_v46 = vpop.f32.mrb[8].mxu1 }
 0xeda   : > { %v701_v47 = vadd.f32 %v700_v45, %v694_v46  ;;  %v1171_v48 = vpop.f32.mrb[9].mxu1  ;;  %v1088_v45 = vld [vmem:[%s1742_s3] ss:$0 sm:$0xff] (!%p1087_p7) }
 0xedb   : > { %v697_v49 = vpop.f32.mrb[10].mxu1 }
 0xedc   : > { %1295 = vtanh.f32 %v701_v47  ;;  %v1172_v50 = vpop.f32.mrb[11].mxu1 }
 0xee6   : > { %v1296_v51 = vpop.eup %1295 }
 0xee7   : > { %707 = vrot.lane.b32.xlu1 %v1296_v51, %s1430_s15  ;;  %v703_v52 = vmul.f32 0.5, %v1296_v51 }
 0xee9   : > { %v704_v53 = vadd.f32 0.5, %v703_v52 }
 0xeeb   : > { %v705_v3 = vmul.f32 %v704_v53, %v644_v39 }
 0xf59   : > { %v708_v2 = vpop.permute.xlu1 %707 }
 0xf5a   : > { %v710_v54 = vmul.f32 %v708_v2, %v704_v53 }
 0xf5c   : > { %712 = vrot.lane.b32.xlu0 %v710_v54, %s1431_s27 }
 0xfce   : > { %v713_v55 = vpop.permute.xlu0 %712 }
 0xfcf   : > { %v715_v4 = vadd.f32 %v713_v55, %v705_v3 }
 0xfd1   : > { %1297 = vtanh.f32 %v715_v4 }
 0xfdb   : > { %v1298_v56 = vpop.eup %1297 }
 0xfdc   : > { %718 = vrot.lane.b32.xlu1 %v1298_v56, %s1430_s15 }
0x104e   : > { %v719_v57 = vpop.permute.xlu1 %718 }
0x104f   : > { %v721_v58 = vmul.f32 %v719_v57, %v704_v53 }
0x1051   : > { %v722_v59 = vpack.c.bf16 %v721_v58, %v721_v58 }
0x1053   : > { %726 = vrot.lane.b32.xlu0 %v722_v59, %s1431_s27 }
0x10c5   : > { %v727_v60 = vpop.permute.xlu0 %726 }
0x10c6   : > { %1178 = vmatmul.mubr.msk.bf16.vlgmr.msra.gmra.mrb[12].mxu0 %vm297_vm3, %v727_v60 }
0x10c7   : > { %1193 = vmatprep.mubr.msk.bf16.mxu0 (!%p1087_p7), %vm1435_vm5, %v1434_v40  ;;  %1190 = vmatpush3.bf16.msra.mxu0 (!%p1087_p7), %v1307_v41 }
0x10c8   : > { %1191 = vmatprep.subr.bf16.mxu0 (!%p1087_p7), %v1434_v40 }
0x10cb   : > { %1192 = vmatpush3.bf16.msra.mxu0 (!%p1087_p7), %v1308_v43 }
0x1199   : > { %v765_v63 = vpop.f32.mrb[12].mxu0 }
0x119a   : > { %v772_v0 = vadd.f32 %v771_v62, %v765_v63  ;;  %v1179_v1 = vpop.f32.mrb[13].mxu0 }
0x119b   : > { %v768_v5 = vpop.f32.mrb[14].mxu0 }
0x119c   : > { %1299 = vtanh.f32 %v772_v0  ;;  %v1180_v6 = vpop.f32.mrb[15].mxu0 }
0x11a6   : > { %v1300_v7 = vpop.eup %1299 }
0x11a7   : > { %778 = vrot.lane.b32.xlu1 %v1300_v7, %s1430_s15  ;;  %v774_v8 = vmul.f32 0.5, %v1300_v7 }
0x11a9   : > { %v775_v9 = vadd.f32 0.5, %v774_v8 }
0x11ab   : > { %v776_v12 = vmul.f32 %v775_v9, %v715_v4 }
0x1219   : > { %v779_v10 = vpop.permute.xlu1 %778 }
0x121a   : > { %v781_v11 = vmul.f32 %v779_v10, %v775_v9 }
0x121c   : > { %783 = vrot.lane.b32.xlu0 %v781_v11, %s1431_s27 }
0x128e   : > { %v784_v13 = vpop.permute.xlu0 %783 }
0x128f   : > { %v786_v14 = vadd.f32 %v784_v13, %v776_v12 }
0x1291   : > { %1301 = vtanh.f32 %v786_v14 }
0x129b   : > { %v1302_v15 = vpop.eup %1301 }
0x129c   : > { %789 = vrot.lane.b32.xlu1 %v1302_v15, %s1430_s15 }
0x130e   : > { %v790_v16 = vpop.permute.xlu1 %789 }
0x130f   : > { %v792_v17 = vmul.f32 %v790_v16, %v775_v9 }
0x1311   : > { %v793_v18 = vpack.c.bf16 %v792_v17, %v792_v17 }
0x1313   : > { %797 = vrot.lane.b32.xlu0 %v793_v18, %s1431_s27 }
0x1385   : > { %v798_v19 = vpop.permute.xlu0 %797 }
0x1386   : > { %1186 = vmatmul.mubr.msk.bf16.vlgmr.msra.gmra.mrb[12].mxu1 %vm297_vm3, %v798_v19 }
0x1459   : > { %v836_v21 = vpop.f32.mrb[12].mxu1 }
0x145a   : > { %v843_v22 = vadd.f32 %v842_v20, %v836_v21  ;;  %v1187_v23 = vpop.f32.mrb[13].mxu1 }
0x145b   : > { %v839_v24 = vpop.f32.mrb[14].mxu1 }
0x145c   : > { %1303 = vtanh.f32 %v843_v22  ;;  %v1188_v25 = vpop.f32.mrb[15].mxu1 }
0x1466   : > { %v1304_v26 = vpop.eup %1303 }
0x1467   : > { %849 = vrot.lane.b32.xlu1 %v1304_v26, %s1430_s15  ;;  %v845_v27 = vmul.f32 0.5, %v1304_v26 }
0x1469   : > { %v846_v28 = vadd.f32 0.5, %v845_v27 }
0x146b   : > { %v847_v31 = vmul.f32 %v846_v28, %v786_v14 }
0x14d9   : > { %v850_v29 = vpop.permute.xlu1 %849 }
0x14da   : > { %v852_v30 = vmul.f32 %v850_v29, %v846_v28 }
0x14dc   : > { %854 = vrot.lane.b32.xlu0 %v852_v30, %s1431_s27 }
0x154e   : > { %v855_v32 = vpop.permute.xlu0 %854 }
0x154f   : > { %v857_v33 = vadd.f32 %v855_v32, %v847_v31 }
0x1551   : > { %1305 = vtanh.f32 %v857_v33 }
0x155b   : > { %v1306_v34 = vpop.eup %1305 }
0x155c   : > { %860 = vrot.lane.b32.xlu1 %v1306_v34, %s1430_s15 }
0x1560   : > { %874 = vrot.lane.b32.xlu1 %v857_v33, %s1432_s28 }
0x15ce   : > { %v861_v35 = vpop.permute.xlu1 %860 }
0x15cf   : > { %v863_v36 = vmul.f32 %v861_v35, %v846_v28 }
0x15d1   : > { %v864_v37 = vpack.c.bf16 %v863_v36, %v863_v36 }
0x15d2   : > { %v875_v38 = vpop.permute.xlu1 %874 }
0x15d3   : > { %877 = vst.msk [vmem:[#allocation3] sm:$0xff] %vm297_vm3, %v875_v38  ;;  %868 = vrot.lane.b32.xlu0 %v864_v37, %s1431_s27 }
0x15d7   : > { %893 = vrot.lane.b32.xlu0 (!%p1087_p7), %v864_v37, %s1433_s6 }
0x15db   : > { %955 = vrot.lane.b32.xlu0 (!%p1087_p7), %v953_v42, %s1436_s21 }
0x1640   : > { %881 = sbr.rel (%p1087_p7) target bundleno = 6058 (0x17aa), region = 52 }
0x1645   : > { %v869_v39 = vpop.permute.xlu0 %868 }
0x1646   : > { %872 = vst.msk [vmem:[#allocation2] sm:$0xf] %vm871_vm4, %v869_v39 }
0x1649   : > { %v894_v44 = vpop.permute.xlu0 %893 }
0x164a   : > { %1194 = vmatmul.mubr.msk.bf16.vlgmr.msra.gmra.mrb[0].mxu0 %vm297_vm3, %v894_v44 }
0x164d   : > { %v956_v53 = vpop.permute.xlu0 %955 }
0x171d   : > { %v944_v46 = vpop.f32.mrb[0].mxu0 }
0x171e   : > { %v945_v47 = vadd.f32 %v1088_v45, %v944_v46  ;;  %v1195_v48 = vpop.f32.mrb[1].mxu0 }
0x171f   : > { %v947_v49 = vpop.f32.mrb[2].mxu0 }
0x1720   : > { %v950_v50 = vmul.f32 0.5, %v945_v47  ;;  %v1196_v51 = vpop.f32.mrb[3].mxu0 }
0x1722   : > { %v951_v52 = vmul.f32 1.442695, %v950_v50 }
0x1724   : > { %1309 = vpow2.f32 %v951_v52 }
0x172e   : > { %v1310_v2 = vpop.eup %1309 }
0x172f   : > { %v958_v54 = vmul.f32 %v1310_v2, %v956_v53 }
0x1731   : > { %960 = vrot.lane.b32.xlu1 %v958_v54, %s1437_s26 }
0x1735   : > { %965 = vrot.lane.b32.xlu1 %v945_v47, %s1436_s21 }
0x17a3   : > { %v961_v3 = vpop.permute.xlu1 %960 }
0x17a4   : > { %v963_v55 = vadd.f32 %v961_v3, %v945_v47 }
0x17a7   : > { %v966_v4 = vpop.permute.xlu1 %965 }
0x17a8   : > { %969 = vst.msk [vmem:[#allocation7] sm:$0xff] %vm968_vm6, %v966_v4 }
0x17a9   : > { %971 = vst.msk [vmem:[#allocation7] sm:$0xff] %vm970_vm7, %v963_v55 }
0x17aa PF: > { %p1695_p9 = scmp.eq.s32.totalorder %s1059_s24, 1  ;;  %s1438_s13 = smov [#allocation7]  }
0x17ab   : > { %s981_s29 = sshll.u32 %s1438_s13, 4  ;;  %s982_s29 = int_to_ptr.vmem [resolvable:$true] %s981_s29 }
0x17ac   : > { %s1341_s14 = scalar_lea.vmem %s982_s29, 128  ;;  %p1348_p10 = scmp.lt.s32.totalorder %s982_s29, %s982_s29 }
0x17ad   : > { %p1342_p5 = scmp.ne.s32.totalorder %s982_s29, %s1341_s14  ;;  %p1349_p12 = scmp.lt.s32.totalorder %s1341_s14, %s1341_s14 }
0x17af   : > { %p1343_p6 = pnand %p1342_p5, %p1695_p9  ;;  %p1350_p0 = por %p1349_p12, %p1348_p10 }
0x17b1   : > { %p1344_p8 = pneg %p1343_p6 }
0x17b3   : > { %p1351_p1 = pnand %p1350_p0, %p1344_p8 }
0x17b5   : > { %1354 = shalt.err (!%p1351_p1)
}
0x17b6   : > { %s1355_s24 = scalar_lea.hbm %s1744_s5, 128 }
0x17b7   : > { %p1356_p2 = scmp.ne.s32.totalorder %s1744_s5, %s1355_s24  ;;  %p1361_p3 = scmp.lt.u32.totalorder %s1355_s24, %s1744_s5 }
0x17b9   : > { %p1357_p11 = pnand %p1356_p2, %p1695_p9 }
0x17bb   : > { %p1358_p13 = pneg %p1357_p11 }
0x17bd   : > { %p1363_p4 = pnand %p1361_p3, %p1358_p13 }
0x17bf   : > { %1366 = shalt.err (!%p1363_p4)
}
0x17c0   : > { %1200 = dma.vmem_to_hbm [thread:$0]  (%p1695_p9), %s982_s29, 128, %s1744_s5, [#allocation6]  }
0x17c1   : > { %1396 = dma.done.wait (%p1695_p9), [#allocation6], 128  }
0x17c2   : > { %1398 = vsyncadd (%p1695_p9), [#allocation6], 4294967168 }
0x17c3 PF: > { %s19_s23 = sadd.s32 1, %s1421_s23   ;;  %s1749_s18 = smov %s1405_s19 }
0x17c4   : > { %p16_p7 = scmp.ge.s32.totalorder %s19_s23, 4   ;;  %s1750_s19 = smov %s1409_s20 }
0x17c5   : > { %s1751_s20 = smov %s1520_s30  ;;  %s1752_s21 = smov %s1417_s22 }
0x17c6   : > { %s1753_s22 = smov %s1755_s25  ;;  %18 = sbr.rel (!%p16_p7) target bundleno = 5 (0x5), region = 96 }
0x17cd   :  { %994 = vsyncpa [#allocation5], 1 }
0x17ce   :  { %996 = vsyncpa [#allocation5 + $0x1], 1 }
0x17cf   :  { %997 = vsyncpa [#allocation6], 1 }
0x17d0   :  { %999 = vsyncpa [#allocation6 + $0x1], 1 }

</bundles_post_ra>
